<compile_context>
chip_gen: v7x
topology: tpu7x:2x2x1
jax: 0.10.0
libtpu: 0.0.40
codegen_flags: <defaults>
</compile_context>

<pallas_src>
import jax
import jax.numpy as jnp
from jax.experimental import pallas as pl
from jax.experimental.pallas import tpu as pltpu


def _gapnstd_kernel(x_ref, w_ref, o_ref):
    """x_ref: (1, TC, HW) VMEM;  w_ref: (2,) SMEM = [w_avg, w_std];  o_ref: (1, TC, 1) VMEM."""
    hw = x_ref.shape[-1]
    # Single load, single upcast to f32 (works for bf16 or f32 inputs).
    xf = x_ref[0].astype(jnp.float32)                                # (TC, HW)

    # Global average pool over spatial (lane-axis reduction -> XLU).
    mean = jnp.sum(xf, axis=-1, keepdims=True) * (1.0 / hw)          # (TC, 1)

    # Unbiased std over spatial (torch.std default, correction=1), two-pass
    # (mean subtraction) for good numerics -- all data is already in VMEM.
    diff = xf - mean
    denom = hw - 1 if hw > 1 else 1                                  # guard H*W == 1
    var = jnp.sum(diff * diff, axis=-1, keepdims=True) * (1.0 / denom)
    std = jnp.sqrt(var)

    # ChannelMixer: 1x1 Conv2d(2->1, bias=False) over [avg, std], then ReLU.
    mixed = w_ref[0] * mean + w_ref[1] * std                         # (TC, 1)
    o_ref[0] = jnp.maximum(mixed, 0.0).astype(o_ref.dtype)


def _pick_channel_tile(C, HW, itemsize, budget_bytes):
    """Channel-chunk size: whole C if it fits, else the largest multiple-of-8 divisor."""
    if C * HW * itemsize <= budget_bytes:
        return C
    best = None
    tc = 8
    while tc <= C:
        if C % tc == 0 and tc * HW * itemsize <= budget_bytes:
            best = tc
        tc += 8
    # TODO(synk): if even an 8-channel chunk overflows (huge H*W), tile the
    # spatial axis as well (two-pass / Welford across spatial chunks).
    return best if best is not None else C


def gapnstd_ch(x, weight):
    """Forward pass of GAPnSTD_ch.

    x:      (B, C, H, W)  activations (f32 or bf16)
    weight: (1, 2, 1, 1)  ChannelMixer's Conv2d(2, 1, 1, bias=False) weight
    returns (B, C, 1, 1)
    """
    B, C, H, W = x.shape
    HW = H * W
    x3 = x.reshape(B, C, HW)                       # contiguous merge -> no copy
    w = weight.reshape(2).astype(jnp.float32)      # [w_avg, w_std] scalars -> SMEM

    budget = 4 * 1024 * 1024                       # per-block input bytes
    TC = _pick_channel_tile(C, HW, x3.dtype.itemsize, budget)
    n_cb = C // TC

    out = pl.pallas_call(
        _gapnstd_kernel,
        out_shape=jax.ShapeDtypeStruct((B, C, 1), x.dtype),
        grid_spec=pltpu.PrefetchScalarGridSpec(
            num_scalar_prefetch=0,
            grid=(B, n_cb),
            in_specs=[
                pl.BlockSpec((1, TC, HW), lambda b, c: (b, c, 0)),        # activations
                pl.BlockSpec(memory_space=pltpu.MemorySpace.SMEM),        # 2 mixer taps
            ],
            out_specs=pl.BlockSpec((1, TC, 1), lambda b, c: (b, c, 0)),
        ),
        compiler_params=pltpu.CompilerParams(
            dimension_semantics=("parallel", "parallel"),
            vmem_limit_bytes=32 * 1024 * 1024,
        ),
    )(x3, w)

    return out.reshape(B, C, 1, 1)


def _reference(x, weight):
    """Plain-JAX reference matching GAPnSTD_ch (avg pool, unbiased std, 1x1 mix, ReLU)."""
    B, C, H, W = x.shape
    xf = x.astype(jnp.float32).reshape(B, C, H * W)
    mean = jnp.mean(xf, axis=-1, keepdims=True)
    var = jnp.sum((xf - mean) ** 2, axis=-1, keepdims=True) / max(H * W - 1, 1)
    std = jnp.sqrt(var)
    w = weight.reshape(2).astype(jnp.float32)
    out = jnp.maximum(w[0] * mean + w[1] * std, 0.0)
    return out.reshape(B, C, 1, 1).astype(x.dtype)


if __name__ == "__main__":
    key = jax.random.PRNGKey(0)
    kx, kw = jax.random.split(key)

    B, C, H, W = 2, 4, 16, 16
    x = jax.random.normal(kx, (B, C, H, W), dtype=jnp.float32)

    # ChannelMixer Conv2d(2, 1, kernel_size=1, bias=False) weight: (out=1, in=2, 1, 1)
    bound = 1.0 / (2 ** 0.5)   # mimic PyTorch's uniform fan-in bound
    weight = jax.random.uniform(kw, (1, 2, 1, 1), jnp.float32,
                                minval=-bound, maxval=bound)

    y = gapnstd_ch(x, weight)
    y = jax.block_until_ready(y)

    y_ref = _reference(x, weight)
    assert y.shape == (B, C, 1, 1)
    assert jnp.allclose(y, y_ref, atol=1e-5, rtol=1e-5), \
        float(jnp.max(jnp.abs(y - y_ref)))

    print("KERNEL_OK")
</pallas_src>

<mosaic_0001>
module attributes {stable_mosaic.version = 11 : i64} {
  func.func @_gapnstd_kernel(%arg0: i32, %arg1: i32, %arg2: memref<1x4x256xf32, #tpu.memory_space<vmem>>, %arg3: memref<2xf32, #tpu.memory_space<smem>>, %arg4: memref<1x4x1xf32, #tpu.memory_space<vmem>>) attributes {dimension_semantics = [#tpu.dimension_semantics<parallel>, #tpu.dimension_semantics<parallel>], iteration_bounds = array<i64: 2, 1>, scalar_prefetch = 0 : i64, scratch_operands = 0 : i64, tpu.core_type = #tpu.core_type<tc>, window_params = [{transform_indices = @transform_0, window_bounds = array<i64: 1, 4, 256>}, {transform_indices = @transform_1, window_bounds = array<i64: 2>}, {transform_indices = @transform_2, window_bounds = array<i64: 1, 4, 1>}]} {
    %c0 = arith.constant 0 : index
    %c0_0 = arith.constant 0 : index
    %c0_1 = arith.constant 0 : index
    %0 = vector.load %arg2[%c0, %c0_0, %c0_1] : memref<1x4x256xf32, #tpu.memory_space<vmem>>, vector<1x4x256xf32>
    %1 = vector.shape_cast %0 : vector<1x4x256xf32> to vector<4x256xf32>
    %cst = arith.constant dense<0.000000e+00> : vector<4xf32>
    %2 = vector.multi_reduction <add>, %1, %cst [1] : vector<4x256xf32> to vector<4xf32>
    %3 = vector.shape_cast %2 : vector<4xf32> to vector<4x1xf32>
    %cst_2 = arith.constant 3.906250e-03 : f32
    %4 = vector.broadcast %cst_2 : f32 to vector<4x1xf32>
    %5 = arith.mulf %3, %4 : vector<4x1xf32>
    %6 = vector.broadcast %5 : vector<4x1xf32> to vector<4x256xf32>
    %7 = arith.subf %1, %6 : vector<4x256xf32>
    %8 = arith.mulf %7, %7 : vector<4x256xf32>
    %cst_3 = arith.constant dense<0.000000e+00> : vector<4xf32>
    %9 = vector.multi_reduction <add>, %8, %cst_3 [1] : vector<4x256xf32> to vector<4xf32>
    %10 = vector.shape_cast %9 : vector<4xf32> to vector<4x1xf32>
    %cst_4 = arith.constant 0.00392156886 : f32
    %11 = vector.broadcast %cst_4 : f32 to vector<4x1xf32>
    %12 = arith.mulf %10, %11 : vector<4x1xf32>
    %13 = math.sqrt %12 : vector<4x1xf32>
    %c0_5 = arith.constant 0 : index
    %14 = memref.load %arg3[%c0_5] : memref<2xf32, #tpu.memory_space<smem>>
    %15 = vector.broadcast %14 : f32 to vector<4x1xf32>
    %16 = arith.mulf %15, %5 : vector<4x1xf32>
    %c1 = arith.constant 1 : index
    %17 = memref.load %arg3[%c1] : memref<2xf32, #tpu.memory_space<smem>>
    %18 = vector.broadcast %17 : f32 to vector<4x1xf32>
    %19 = arith.mulf %18, %13 : vector<4x1xf32>
    %20 = arith.addf %16, %19 : vector<4x1xf32>
    %cst_6 = arith.constant 0.000000e+00 : f32
    %21 = vector.broadcast %cst_6 : f32 to vector<4x1xf32>
    %22 = arith.maximumf %20, %21 : vector<4x1xf32>
    %c0_7 = arith.constant 0 : index
    %c0_8 = arith.constant 0 : index
    %c0_9 = arith.constant 0 : index
    %23 = vector.load %arg4[%c0_7, %c0_8, %c0_9] : memref<1x4x1xf32, #tpu.memory_space<vmem>>, vector<1x4x1xf32>
    %24 = vector.shape_cast %23 : vector<1x4x1xf32> to vector<4x1xf32>
    %25 = vector.shape_cast %22 : vector<4x1xf32> to vector<1x4x1xf32>
    tpu.vector_store %arg4[%c0_7, %c0_8, %c0_9], %25 {strides = array<i32>} : memref<1x4x1xf32, #tpu.memory_space<vmem>>, vector<1x4x1xf32>,
    return
  }
  func.func @transform_0(%arg0: i32, %arg1: i32) -> (i32, i32, i32) {
    %c0_i32 = arith.constant 0 : i32
    %c0_i32_0 = arith.constant 0 : i32
    return %arg0, %arg1, %c0_i32 : i32, i32, i32
  }
  func.func @transform_1(%arg0: i32, %arg1: i32) -> i32 {
    %c0_i32 = arith.constant 0 : i32
    %c0_i32_0 = arith.constant 0 : i32
    return %c0_i32 : i32
  }
  func.func @transform_2(%arg0: i32, %arg1: i32) -> (i32, i32, i32) {
    %c0_i32 = arith.constant 0 : i32
    %c0_i32_0 = arith.constant 0 : i32
    return %arg0, %arg1, %c0_i32 : i32, i32, i32
  }
}

</mosaic_0001>

<bundles_post_ra>
// kernel: tpu_custom_call.1
= control target key start
LH: loop header
LB: loop body
LE: loop exit
PB: predicated region body
PF: predicated region fallthrough
CT: control target
= control target key end

     0   :  { %7 = vsyncpa [#allocation3], 0  ;;  %s699_s0 = inlined_call_operand.hbm [shape: f32[2,4,256], index: 0, kind: input, shape index: {}]   ;;  %s700_s1 = inlined_call_operand.vmem [shape: f32[2], index: 1, kind: input, shape index: {}]   ;;  %s701_s2 = inlined_call_operand.vmem [shape: f32[2,4,1], index: 2, kind: output, shape index: {}]  }
   0x1   :  { %9 = vsyncpa [#allocation3 + $0x1], 0 }
   0x2   :  { %10 = vsyncpa [#allocation4], 0  ;;  %s549_s9 = smov 0   ;;  %s551_s10 = smov 0  }
   0x3   :  { %s553_s11 = smov 0   ;;  %s555_s12 = smov 0  }
   0x4   :  { %s557_s13 = smov 0   ;;  %s559_s14 = smov 0  }
   0x5 LB: > { %s344_s15 = sadd.s32 4294967295, %s529_s14   ;;  %p50_p0 = scmp.ne.s32.totalorder %s513_s10, %s509_s9  ;;  %s529_s14 = sphi %s559_s14, %s16_s14   ;;  %s525_s13 = sphi %s557_s13, %s716_s13   ;;  %s521_s12 = sphi %s555_s12, %s715_s12   ;;  %s517_s11 = sphi %s553_s11, %s714_s11   ;;  %s513_s10 = sphi %s551_s10, %s713_s10   ;;  %s509_s9 = sphi %s549_s9, %s712_s9  }
   0x6   : > { %p579_p1 = scmp.eq.s32.totalorder %s344_s15, 0  ;;  %p346_p2 = scmp.ge.s32.totalorder %s529_s14, 1 }
   0x7   : > { %p110_p3 = scmp.lt.s32.totalorder %s529_s14, 3  ;;  %s123_s20 = sshll.u32 %s700_s1, 4  ;;  %s124_s20 = int_to_ptr.vmem [resolvable:$true] %s123_s20 }
   0x8   : > { %s705_s16 = scalar_select %p579_p1, 1, 0 }
   0x9   : > { %p587_p4 = por %p579_p1, %p50_p0  ;;  %p594_p5 = pnand %p346_p2, %p110_p3 }
   0xa   : > { %s28_s23 = sadd.s32 1, %s525_s13  ;;  %s37_s24 = sadd.s32 1, %s517_s11 }
   0xb   : > { %s706_s17 = scalar_select %p587_p4, 1, 0 }
   0xc   : > { %p366_p6 = pneg %p594_p5  ;;  %p30_p8 = scmp.ge.s32.totalorder %s28_s23, 2 }
   0xd   : > { %s430_s25 = scalar_lea.vmem %s124_s20, 16  ;;  %p438_p13 = scmp.lt.s32.totalorder %s124_s20, %s124_s20 }
   0xe   : > { %p602_p7 = pnand %p366_p6, %p579_p1  ;;  %p431_p9 = scmp.ne.s32.totalorder %s124_s20, %s430_s25 }
   0xf   : > { %p439_p0 = scmp.lt.s32.totalorder %s430_s25, %s430_s25 }
  0x10   : > { %p432_p10 = pneg %p602_p7 }
  0x11   : > { %p440_p2 = por %p439_p0, %p438_p13 }
  0x12   : > { %p433_p11 = pnand %p432_p10, %p431_p9 }
  0x14   : > { %p434_p12 = pneg %p433_p11 }
  0x16   : > { %p441_p3 = pnand %p440_p2, %p434_p12 }
  0x18   : > { %444 = shalt.err (!%p441_p3)
}
  0x19   : > { %s531_s26 = smov [#allocation5]   ;;  %s718_s23 = smov (%p30_p8, %s28_s23), 0 }
  0x1a   : > { %369 = dma.vmem_to_smem (!%p602_p7), %s124_s20, 16, %s531_s26, [#allocation4]  }
  0x1b   : > { %p44_p6 = scmp.ne.s32.totalorder %s517_s11, %s513_s10  ;;  %p45_p9 = scmp.eq.s32.totalorder %s529_s14, 0 }
  0x1c   : > { %s32_s27 = ssub.s32 %s525_s13, %s718_s23  ;;  %p375_p10 = scmp.lt.s32.totalorder %s529_s14, 2 }
  0x1d   : > { %p35_p11 = scmp.eq.s32.totalorder %s32_s27, 0  ;;  %p46_p12 = por %p45_p9, %p44_p6 }
  0x1e   : > { %s134_s28 = sand.u32 1, %s517_s11   ;;  %s359_s29 = sshll.u32 %s525_s13, 7 }
  0x1f   : > { %s623_s30 = scalar_select %p35_p11, %s517_s11, %s37_s24  }
  0x20   : > { %s349_s3 = sshll.u32 %s134_s28, 3  ;;  %s628_s6 = scalar_lea.hbm %s699_s0, %s359_s29 }
  0x21   : > { %s138_s7 = scalar_lea.vmem [#allocation2], %s349_s3  ;;  %p630_p7 = pnand %p375_p10, %p46_p12 }
  0x22   : > { %s148_s8 = sshll.u32 %s138_s7, 4  ;;  %s135_s15 = scalar_lea.sflag [#allocation3], %s134_s28  ;;  %s634_s8 = int_to_ptr.vmem [resolvable:$true] %s148_s8 }
  0x23   : > { %s445_s18 = scalar_lea.hbm %s628_s6, 128  ;;  %p447_p13 = pneg %p630_p7 }
  0x24   : > { %p446_p8 = scmp.ne.s32.totalorder %s628_s6, %s445_s18  ;;  %s450_s22 = scalar_lea.hbm %s699_s0, 256 }
  0x25   : > { %p451_p3 = scmp.lt.u32.totalorder %s628_s6, %s699_s0  ;;  %p452_p6 = scmp.lt.u32.totalorder %s450_s22, %s445_s18 }
  0x26   : > { %p448_p0 = pnand %p447_p13, %p446_p8  ;;  %p454_p10 = scmp.lt.u32.totalorder %s445_s18, %s628_s6 }
  0x27   : > { %p453_p9 = por %p452_p6, %p451_p3 }
  0x28   : > { %p449_p2 = pneg %p448_p0 }
  0x29   : > { %p455_p11 = por %p454_p10, %p453_p9 }
  0x2b   : > { %p456_p12 = pnand %p455_p11, %p449_p2 }
  0x2d   : > { %459 = shalt.err (!%p456_p12)
}
  0x2e   : > { %s460_s26 = scalar_lea.vmem %s634_s8, 128  ;;  %s532_s27 = smov [#allocation2]  }
  0x2f   : > { %p461_p8 = scmp.ne.s32.totalorder %s634_s8, %s460_s26  ;;  %s465_s28 = sshll.u32 %s532_s27, 4  ;;  %s466_s28 = int_to_ptr.vmem [resolvable:$false] %s465_s28 }
  0x30   : > { %s467_s29 = scalar_lea.vmem %s466_s28, 256  ;;  %p468_p4 = scmp.lt.s32.totalorder %s634_s8, %s466_s28 }
  0x31   : > { %p463_p0 = pnand %p461_p8, %p447_p13  ;;  %p469_p3 = scmp.lt.s32.totalorder %s467_s29, %s460_s26 }
  0x33   : > { %p464_p1 = pneg %p463_p0  ;;  %p470_p6 = por %p469_p3, %p468_p4 }
  0x35   : > { %p471_p9 = pnand %p470_p6, %p464_p1 }
  0x37   : > { %474 = shalt.err (!%p471_p9)
}
  0x38   : > { %373 = dma.hbm_to_vmem [thread:$0]  (!%p630_p7), %s628_s6, 128, %s634_s8, %s135_s15  }
  0x39   : > { %157 = sbr.rel (%p594_p5) target bundleno = 397 (0x18d), region = 28  ;;  %s159_s3 = sand.u32 (!%p594_p5), 1, %s513_s10  }
  0x3a   : > { %s353_s4 = sshll.u32 (!%p594_p5), %s159_s3, 3  ;;  %s160_s5 = scalar_lea.sflag (!%p594_p5), [#allocation3], %s159_s3 }
  0x3b   : > { %s163_s7 = scalar_lea.vmem (!%p594_p5), [#allocation2], %s353_s4  ;;  %p710_p13 = scmp.ne.s32.totalorder (!%p594_p5), %s706_s17, 0 }
  0x40   : > { %500 = dma.done.wait (%p710_p13), %s160_s5, 128  }
  0x41   : > { %502 = vsyncadd (%p710_p13), %s160_s5, 4294967168  ;;  %p711_p1 = scmp.ne.s32.totalorder %s705_s16, 0 }
  0x43   : > { %504 = dma.done.wait (%p711_p1), [#allocation4], 16  }
  0x44   : > { %506 = vsyncadd (%p711_p1), [#allocation4], 4294967280 }
  0x45   : > { %172 = sfence }
  0x46   : > { %v198_v0 = vld [vmem:[%s163_s7] sm:$0xff]  ;;  %vm202_vm0 = vcmask 1043456   ;;  %v533_v5 = vmov 839922192   ;;  %v213_v7 = vlaneseq  ;;  %s236_s16 = sld [smem:[#allocation5]]  ;;  %s356_s17 = sld [smem:[#allocation5 + $0x1]] }
  0x47   : > { %v200_v1 = vcombine.high %v198_v0, %v198_v0  ;;  %v203_v2 = vsel %vm202_vm0, %v198_v0, 0.0  ;;  %v211_v6 = vunpack.c.l.s4 %v533_v5  ;;  %p191_p4 = scmp.lt.s32.totalorder %s521_s12, 1  ;;  %vm244_vm3 = vcmask 3072  }
  0x48   : > { %v214_v9 = vshrl.u32 %v213_v7, 7 }
  0x49   : > { %v204_v3 = vsel %vm202_vm0, %v200_v1, 0.0  ;;  %v212_v8 = vunpack.c.0.s8 %v211_v6  ;;  %s720_s12 = smov (!%p191_p4, %s521_s12), 1 }
  0x4a   : > { %v205_v4 = vadd.f32 %v204_v3, %v203_v2  ;;  %s355_s21 = sshll.u32 %s720_s12, 2 }
  0x4b   : > { %v215_v10 = vsub.s32 %v212_v8, %v214_v9  ;;  %s197_s9 = scalar_lea.vmem %s701_s2, %s355_s21 }
  0x4c   : > { %206 = vadd.xlane.f32.xlu0 %v205_v4  ;;  %v237_v24 = vstv %s236_s16  ;;  %v240_v25 = vstv %s356_s17 }
  0xd9   : > { %v207_v11 = vpop.xlane.xlu0 %206 }
  0xda   : > { %v208_v12 = vmul.f32 0.00390625, %v207_v11 }
  0xdc   : > { %v216_v13 = vrot.slane %v208_v12, %v215_v10  ;;  %v238_v29 = vmul.f32 %v237_v24, %v208_v12 }
  0xde   : > { %v218_v14 = vsub.f32 %v198_v0, %v216_v13 }
  0xe0   : > { %v219_v15 = vmul.f32 %v218_v14, %v218_v14 }
  0xe2   : > { %v221_v16 = vcombine.high %v219_v15, %v219_v15  ;;  %v223_v17 = vsel %vm202_vm0, %v219_v15, 0.0 }
  0xe4   : > { %v224_v18 = vsel %vm202_vm0, %v221_v16, 0.0 }
  0xe5   : > { %v225_v19 = vadd.f32 %v224_v18, %v223_v17 }
  0xe7   : > { %226 = vadd.xlane.f32.xlu0 %v225_v19 }
 0x174   : > { %v227_v20 = vpop.xlane.xlu0 %226 }
 0x175   : > { %v228_v21 = vmul.f32 0.003921569, %v227_v20 }
 0x177   : > { %428 = vrsqrt.f32 %v228_v21  ;;  %vm231_vm1 = vcmp.eq.f32.partialorder %v228_v21, inf  ;;  %v234_v26 = vand.u32 2147483648, %v228_v21  ;;  %vm233_vm2 = vcmp.eq.f32.partialorder %v228_v21, 0.0 }
 0x181   : > { %v429_v22 = vpop.eup %428 }
 0x182   : > { %v230_v23 = vmul.f32 %v429_v22, %v228_v21 }
 0x184   : > { %v232_v27 = vsel %vm231_vm1, %v228_v21, %v230_v23 }
 0x185   : > { %v235_v28 = vsel %vm233_vm2, %v234_v26, %v232_v27 }
 0x186   : > { %v241_v30 = vmul.f32 %v240_v25, %v235_v28 }
 0x188   : > { %v242_v31 = vadd.f32 %v241_v30, %v238_v29 }
 0x18a   : > { %v243_v32 = vmax.f32 %v242_v31, 0.0 }
 0x18c   : > { %245 = vst.msk [vmem:[%s197_s9] sm:$0xf] %vm244_vm3, %v243_v32 }
 0x18d PF: > { %s16_s14 = sadd.s32 1, %s529_s14   ;;  %s712_s9 = smov %s513_s10 }
 0x18e   : > { %p13_p5 = scmp.ge.s32.totalorder %s16_s14, 4   ;;  %s713_s10 = smov %s517_s11 }
 0x18f   : > { %s714_s11 = smov %s623_s30  ;;  %s715_s12 = smov %s525_s13 }
 0x190   : > { %s716_s13 = smov %s718_s23  ;;  %15 = sbr.rel (!%p13_p5) target bundleno = 5 (0x5), region = 73 }
 0x197   :  { %271 = vsyncpa [#allocation3], 1 }
 0x198   :  { %273 = vsyncpa [#allocation3 + $0x1], 1 }
 0x199   :  { %274 = vsyncpa [#allocation4], 1 }
 0x19a   :  { %276 = vsyncpa [#allocation4 + $0x1], 1 }

</bundles_post_ra>
